<compile_context>
chip_gen: v7x
topology: tpu7x:2x2x1
jax: 0.10.0
libtpu: 0.0.40
codegen_flags: <defaults>
</compile_context>

<pallas_src>
import functools

import jax
import jax.numpy as jnp
from jax.experimental import pallas as pl
from jax.experimental.pallas import tpu as pltpu

LANE = 128
MAX_BLOCK_ROWS = 8192      # 4 MiB f32 per input buffer per block
CHUNK_ROWS = 1024          # in-kernel fold granularity (512 KiB f32 temps)


def _dice_partials_kernel(yhat_ref, y_ref, out_ref, *,
                          block_rows, total_rows, num_blocks, mask_tail):
    """Writes this block's partial sums packed as a (24, 128) slab:
         rows  0..7  : sum(y_hat * y) partials
         rows  8..15 : sum(y_hat)     partials
         rows 16..23 : sum(y)         partials
    """
    i = pl.program_id(0)

    use_chunks = (block_rows >= CHUNK_ROWS) and (block_rows % CHUNK_ROWS == 0)
    if mask_tail:
        # Wrapper guarantees a ragged tail only occurs with 8192-row blocks.
        assert use_chunks

    def chunked_partials(mask):
        n_chunks = block_rows // CHUNK_ROWS

        def body(c, carry):
            a_int, a_yh, a_yt = carry
            off = pl.multiple_of(c * CHUNK_ROWS, CHUNK_ROWS)
            yh = yhat_ref[pl.ds(off, CHUNK_ROWS), :].astype(jnp.float32)
            yt = y_ref[pl.ds(off, CHUNK_ROWS), :].astype(jnp.float32)
            if mask:
                # Zero invalid rows BEFORE any arithmetic so garbage (possibly
                # NaN) in the Pallas-padded tail cannot propagate.
                row = (jax.lax.broadcasted_iota(jnp.int32, yh.shape, 0)
                       + i * block_rows + c * CHUNK_ROWS)
                valid = row < total_rows
                yh = jnp.where(valid, yh, 0.0)
                yt = jnp.where(valid, yt, 0.0)
            # (CHUNK_ROWS,128) -> (8,128) via tile-aligned reshape + VPU adds.
            a_int = a_int + jnp.sum((yh * yt).reshape(-1, 8, LANE), axis=0)
            a_yh = a_yh + jnp.sum(yh.reshape(-1, 8, LANE), axis=0)
            a_yt = a_yt + jnp.sum(yt.reshape(-1, 8, LANE), axis=0)
            return a_int, a_yh, a_yt

        zero = jnp.zeros((8, LANE), jnp.float32)
        a_int, a_yh, a_yt = jax.lax.fori_loop(
            0, n_chunks, body, (zero, zero, zero), unroll=True)
        return jnp.concatenate([a_int, a_yh, a_yt], axis=0)

    def direct_partials():
        # Small single-block path (row count may not be a multiple of 8).
        yh = yhat_ref[...].astype(jnp.float32)
        yt = y_ref[...].astype(jnp.float32)
        out_ref[...] = jnp.zeros_like(out_ref)
        out_ref[0, 0:1, :] = jnp.sum(yh * yt, axis=0, keepdims=True)
        out_ref[0, 8:9, :] = jnp.sum(yh, axis=0, keepdims=True)
        out_ref[0, 16:17, :] = jnp.sum(yt, axis=0, keepdims=True)

    if not use_chunks:
        direct_partials()
    elif not mask_tail:
        out_ref[0] = chunked_partials(False)
    else:
        last = num_blocks - 1

        @pl.when(i != last)
        def _full_block():
            out_ref[0] = chunked_partials(False)

        @pl.when(i == last)
        def _tail_block():
            out_ref[0] = chunked_partials(True)


def dice_loss(y_hat, y, *, smooth=1.0, eps=1e-7):
    """Scalar soft-dice loss, matching the PyTorch DiceLoss.forward."""
    assert y_hat.shape == y.shape
    n = y_hat.size
    assert n > 0

    yh = jnp.ravel(y_hat)
    yt = jnp.ravel(y)

    # Pad only to a whole 128-lane row (zeros contribute nothing to any of the
    # three sums).  When n % 128 == 0 no pad and no extra HBM copy happens.
    if n % LANE != 0:
        pad = LANE - n % LANE
        yh = jnp.pad(yh, (0, pad))
        yt = jnp.pad(yt, (0, pad))

    rows = yh.size // LANE
    yh2 = yh.reshape(rows, LANE)
    yt2 = yt.reshape(rows, LANE)

    if rows <= MAX_BLOCK_ROWS:
        block_rows = rows              # single exact block (any row count)
    else:
        block_rows = MAX_BLOCK_ROWS    # multiple of CHUNK_ROWS (and of 16)
    num_blocks = pl.cdiv(rows, block_rows)
    mask_tail = (rows % block_rows) != 0   # only possible when rows > MAX

    kernel = functools.partial(
        _dice_partials_kernel,
        block_rows=block_rows,
        total_rows=rows,
        num_blocks=num_blocks,
        mask_tail=mask_tail,
    )

    partials = pl.pallas_call(
        kernel,
        out_shape=jax.ShapeDtypeStruct((num_blocks, 3 * 8, LANE), jnp.float32),
        grid_spec=pltpu.PrefetchScalarGridSpec(
            num_scalar_prefetch=0,
            grid=(num_blocks,),
            in_specs=[
                pl.BlockSpec((block_rows, LANE), lambda i: (i, 0)),
                pl.BlockSpec((block_rows, LANE), lambda i: (i, 0)),
            ],
            out_specs=pl.BlockSpec((1, 3 * 8, LANE), lambda i: (i, 0, 0)),
        ),
        compiler_params=pltpu.CompilerParams(
            dimension_semantics=("parallel",),
            vmem_limit_bytes=40 * 1024 * 1024,
        ),
    )(yh2, yt2)

    # Tiny final reduction + dice scalar math in plain JAX (keeps the grid
    # axis fully parallel so it can shard across TensorCores on v7x).
    sums = jnp.sum(partials.reshape(num_blocks, 3, 8, LANE), axis=(0, 2, 3))
    inter, s_yh, s_y = sums[0], sums[1], sums[2]
    smooth = float(smooth)
    eps = float(eps)
    return 1.0 - (2.0 * inter + smooth) / (s_yh + s_y + smooth + eps)


def _reference_loss(y_hat, y, smooth=1.0, eps=1e-7):
    yh = jnp.ravel(y_hat).astype(jnp.float32)
    yt = jnp.ravel(y).astype(jnp.float32)
    inter = jnp.sum(yh * yt)
    return 1.0 - (2.0 * inter + smooth) / (jnp.sum(yh) + jnp.sum(yt) + smooth + eps)


if __name__ == "__main__":
    key = jax.random.PRNGKey(0)
    k1, k2, k3, k4, k5, k6 = jax.random.split(key, 6)

    # Primary test: NCHW (2, 4, 16, 16), probabilities vs binary targets.
    y_hat = jax.nn.sigmoid(jax.random.normal(k1, (2, 4, 16, 16), jnp.float32))
    y = (jax.random.uniform(k2, (2, 4, 16, 16)) > 0.5).astype(jnp.float32)
    loss = jax.block_until_ready(dice_loss(y_hat, y))
    ref = _reference_loss(y_hat, y)
    assert jnp.allclose(loss, ref, rtol=1e-5, atol=1e-5), (loss, ref)

    # Ragged size: exercises the minimal 128-lane pad + odd-row direct fold,
    # with a bf16 activation passed through in its native dtype.
    y_hat2 = jax.nn.sigmoid(
        jax.random.normal(k3, (2, 3, 37, 53), jnp.float32)).astype(jnp.bfloat16)
    y2 = (jax.random.uniform(k4, (2, 3, 37, 53)) > 0.5).astype(jnp.float32)
    loss2 = jax.block_until_ready(dice_loss(y_hat2, y2))
    ref2 = _reference_loss(y_hat2, y2)
    assert jnp.allclose(loss2, ref2, rtol=1e-5, atol=1e-5), (loss2, ref2)

    # Multi-block path: 2*4*320*410 = 1,049,600 elems = 8200 rows -> parallel
    # 2-block grid, chunked fori_loop fold, pl.when-gated tail mask.
    y_hat3 = jax.random.uniform(k5, (2, 4, 320, 410), jnp.float32)
    y3 = (jax.random.uniform(k6, (2, 4, 320, 410)) > 0.5).astype(jnp.float32)
    loss3 = jax.block_until_ready(dice_loss(y_hat3, y3))
    ref3 = _reference_loss(y_hat3, y3)
    assert jnp.allclose(loss3, ref3, rtol=1e-5, atol=1e-5), (loss3, ref3)

    print("KERNEL_OK")
</pallas_src>

<mosaic_0001>
module attributes {stable_mosaic.version = 11 : i64} {
  func.func @_dice_partials_kernel(%arg0: i32, %arg1: memref<16x128xf32, #tpu.memory_space<vmem>>, %arg2: memref<16x128xf32, #tpu.memory_space<vmem>>, %arg3: memref<1x24x128xf32, #tpu.memory_space<vmem>>) attributes {dimension_semantics = [#tpu.dimension_semantics<parallel>], iteration_bounds = array<i64: 1>, scalar_prefetch = 0 : i64, scratch_operands = 0 : i64, tpu.core_type = #tpu.core_type<tc>, window_params = [{transform_indices = @transform_0, window_bounds = array<i64: 16, 128>}, {transform_indices = @transform_1, window_bounds = array<i64: 16, 128>}, {transform_indices = @transform_2, window_bounds = array<i64: 1, 24, 128>}]} {
    %c0 = arith.constant 0 : index
    %c0_0 = arith.constant 0 : index
    %0 = vector.load %arg1[%c0, %c0_0] : memref<16x128xf32, #tpu.memory_space<vmem>>, vector<16x128xf32>
    %c0_1 = arith.constant 0 : index
    %c0_2 = arith.constant 0 : index
    %1 = vector.load %arg2[%c0_1, %c0_2] : memref<16x128xf32, #tpu.memory_space<vmem>>, vector<16x128xf32>
    %cst = arith.constant 0.000000e+00 : f32
    %2 = vector.broadcast %cst : f32 to vector<1x24x128xf32>
    %c0_3 = arith.constant 0 : index
    %c0_4 = arith.constant 0 : index
    %c0_5 = arith.constant 0 : index
    %3 = vector.load %arg3[%c0_3, %c0_4, %c0_5] : memref<1x24x128xf32, #tpu.memory_space<vmem>>, vector<1x24x128xf32>
    tpu.vector_store %arg3[%c0_3, %c0_4, %c0_5], %2 {strides = array<i32>} : memref<1x24x128xf32, #tpu.memory_space<vmem>>, vector<1x24x128xf32>,
    %4 = arith.mulf %0, %1 : vector<16x128xf32>
    %cst_6 = arith.constant dense<0.000000e+00> : vector<128xf32>
    %5 = vector.multi_reduction <add>, %4, %cst_6 [0] : vector<16x128xf32> to vector<128xf32>
    %6 = vector.shape_cast %5 : vector<128xf32> to vector<1x128xf32>
    %c0_7 = arith.constant 0 : index
    %c0_8 = arith.constant 0 : index
    %c0_9 = arith.constant 0 : index
    %7 = vector.load %arg3[%c0_7, %c0_8, %c0_9] : memref<1x24x128xf32, #tpu.memory_space<vmem>>, vector<1x1x128xf32>
    %8 = vector.shape_cast %7 : vector<1x1x128xf32> to vector<1x128xf32>
    %9 = vector.shape_cast %6 : vector<1x128xf32> to vector<1x1x128xf32>
    tpu.vector_store %arg3[%c0_7, %c0_8, %c0_9], %9 {strides = array<i32>} : memref<1x24x128xf32, #tpu.memory_space<vmem>>, vector<1x1x128xf32>,
    %cst_10 = arith.constant dense<0.000000e+00> : vector<128xf32>
    %10 = vector.multi_reduction <add>, %0, %cst_10 [0] : vector<16x128xf32> to vector<128xf32>
    %11 = vector.shape_cast %10 : vector<128xf32> to vector<1x128xf32>
    %c0_11 = arith.constant 0 : index
    %c8 = arith.constant 8 : index
    %c0_12 = arith.constant 0 : index
    %12 = vector.load %arg3[%c0_11, %c8, %c0_12] : memref<1x24x128xf32, #tpu.memory_space<vmem>>, vector<1x1x128xf32>
    %13 = vector.shape_cast %12 : vector<1x1x128xf32> to vector<1x128xf32>
    %14 = vector.shape_cast %11 : vector<1x128xf32> to vector<1x1x128xf32>
    tpu.vector_store %arg3[%c0_11, %c8, %c0_12], %14 {strides = array<i32>} : memref<1x24x128xf32, #tpu.memory_space<vmem>>, vector<1x1x128xf32>,
    %cst_13 = arith.constant dense<0.000000e+00> : vector<128xf32>
    %15 = vector.multi_reduction <add>, %1, %cst_13 [0] : vector<16x128xf32> to vector<128xf32>
    %16 = vector.shape_cast %15 : vector<128xf32> to vector<1x128xf32>
    %c0_14 = arith.constant 0 : index
    %c16 = arith.constant 16 : index
    %c0_15 = arith.constant 0 : index
    %17 = vector.load %arg3[%c0_14, %c16, %c0_15] : memref<1x24x128xf32, #tpu.memory_space<vmem>>, vector<1x1x128xf32>
    %18 = vector.shape_cast %17 : vector<1x1x128xf32> to vector<1x128xf32>
    %19 = vector.shape_cast %16 : vector<1x128xf32> to vector<1x1x128xf32>
    tpu.vector_store %arg3[%c0_14, %c16, %c0_15], %19 {strides = array<i32>} : memref<1x24x128xf32, #tpu.memory_space<vmem>>, vector<1x1x128xf32>,
    return
  }
  func.func @transform_0(%arg0: i32) -> (i32, i32) {
    %c0_i32 = arith.constant 0 : i32
    %c0_i32_0 = arith.constant 0 : i32
    return %arg0, %c0_i32 : i32, i32
  }
  func.func @transform_1(%arg0: i32) -> (i32, i32) {
    %c0_i32 = arith.constant 0 : i32
    %c0_i32_0 = arith.constant 0 : i32
    return %arg0, %c0_i32 : i32, i32
  }
  func.func @transform_2(%arg0: i32) -> (i32, i32, i32) {
    %c0_i32 = arith.constant 0 : i32
    %c0_i32_0 = arith.constant 0 : i32
    %c0_i32_1 = arith.constant 0 : i32
    return %arg0, %c0_i32, %c0_i32_0 : i32, i32, i32
  }
}

</mosaic_0001>

<bundles_post_ra>
// kernel: tpu_custom_call.1
= control target key start
LH: loop header
LB: loop body
LE: loop exit
PB: predicated region body
PF: predicated region fallthrough
CT: control target
= control target key end

     0   :  { %7 = vsyncpa [#allocation3], 0  ;;  %s235_s0 = inlined_call_operand.hbm [shape: f32[16,128], index: 0, kind: input, shape index: {}]   ;;  %s236_s1 = inlined_call_operand.hbm [shape: f32[16,128], index: 1, kind: input, shape index: {}]   ;;  %s237_s2 = inlined_call_operand.hbm [shape: f32[1,24,128], index: 2, kind: output, shape index: {}]  }
   0x1   :  { %8 = vsyncpa [#allocation6], 0 }
   0x2   :  { %9 = vsyncpa [#allocation4], 0  ;;  %s169_s9 = smov [#allocation2]   ;;  %s97_s13 = scalar_lea.hbm %s235_s0, 256 }
   0x3   :  { %s15_s10 = sshll.u32 %s169_s9, 4  ;;  %p98_p0 = scmp.ne.s32.totalorder %s235_s0, %s97_s13  ;;  %s16_s10 = int_to_ptr.vmem [resolvable:$true] %s15_s10 }
   0x4   :  { %p101_p1 = scmp.lt.u32.totalorder %s97_s13, %s235_s0 }
   0x6   :  { %p103_p2 = pnand %p101_p1, %p98_p0 }
   0x8   :  { %106 = shalt.err (!%p103_p2)
}
   0x9   :  { %s107_s18 = scalar_lea.vmem %s16_s10, 256  ;;  %p112_p4 = scmp.lt.s32.totalorder %s16_s10, %s16_s10 }
   0xa   :  { %p108_p3 = scmp.ne.s32.totalorder %s16_s10, %s107_s18  ;;  %p113_p5 = scmp.lt.s32.totalorder %s107_s18, %s107_s18 }
   0xc   :  { %p114_p6 = por %p113_p5, %p112_p4 }
   0xe   :  { %p115_p7 = pnand %p114_p6, %p108_p3 }
  0x10   :  { %118 = shalt.err (!%p115_p7)
}
  0x11   :  { %s170_s19 = smov 128   ;;  %s171_s20 = smov 8  }
  0x12   :  { %21 = dma.hbm_to_vmem [thread:$0]  %s235_s0, 256, %s16_s10, [#allocation3], %s170_s19, %s170_s19, %s171_s20  }
  0x13   :  { %s172_s23 = smov [#allocation5]   ;;  %s119_s27 = scalar_lea.hbm %s236_s1, 256 }
  0x14   :  { %s27_s24 = sshll.u32 %s172_s23, 4  ;;  %p120_p8 = scmp.ne.s32.totalorder %s236_s1, %s119_s27  ;;  %s28_s24 = int_to_ptr.vmem [resolvable:$true] %s27_s24 }
  0x15   :  { %p123_p9 = scmp.lt.u32.totalorder %s119_s27, %s236_s1 }
  0x17   :  { %p125_p10 = pnand %p123_p9, %p120_p8 }
  0x19   :  { %128 = shalt.err (!%p125_p10)
}
  0x1a   :  { %s129_s4 = scalar_lea.vmem %s28_s24, 256  ;;  %p134_p12 = scmp.lt.s32.totalorder %s28_s24, %s28_s24 }
  0x1b   :  { %p130_p11 = scmp.ne.s32.totalorder %s28_s24, %s129_s4  ;;  %p135_p13 = scmp.lt.s32.totalorder %s129_s4, %s129_s4 }
  0x1d   :  { %p136_p0 = por %p135_p13, %p134_p12 }
  0x1f   :  { %p137_p1 = pnand %p136_p0, %p130_p11 }
  0x21   :  { %140 = shalt.err (!%p137_p1)
}
  0x22   :  { %33 = dma.hbm_to_vmem [thread:$0]  %s236_s1, 256, %s28_s24, [#allocation6], %s170_s19, %s170_s19, %s171_s20  }
  0x23   :  { %163 = dma.done.wait [#allocation3], 256  }
  0x24   :  { %164 = vsyncadd [#allocation3], 4294967040 }
  0x25   :  { %165 = dma.done.wait [#allocation6], 256  }
  0x26   :  { %166 = vsyncadd [#allocation6], 4294967040  ;;  %v173_v0 = vmov 0.0   ;;  %v40_v1 = vld [vmem:[#allocation2] sm:$0xff]  ;;  %v41_v2 = vld [vmem:[#allocation2 + $0x8] sm:$0xff]  ;;  %s174_s1 = smov [#allocation7]  }
  0x27   :  { %44 = vst [vmem:[#allocation7] sm:$0xff] %v173_v0  ;;  %45 = vst [vmem:[#allocation7 + $0x8] sm:$0xff] %v173_v0  ;;  %v42_v3 = vld [vmem:[#allocation5] sm:$0xff]  ;;  %v43_v4 = vld [vmem:[#allocation5 + $0x8] sm:$0xff]  ;;  %v57_v6 = vadd.f32 %v41_v2, %v40_v1  ;;  %s78_s6 = sshll.u32 %s174_s1, 4  ;;  %s79_s6 = int_to_ptr.vmem [resolvable:$true] %s78_s6 }
  0x28   :  { %46 = vst [vmem:[#allocation7 + $0x10] sm:$0xff] %v173_v0  ;;  %v47_v5 = vmul.f32 %v42_v3, %v40_v1  ;;  %v48_v7 = vmul.f32 %v43_v4, %v41_v2  ;;  %v65_v8 = vadd.f32 %v43_v4, %v42_v3  ;;  %s141_s7 = scalar_lea.vmem %s79_s6, 384  ;;  %p146_p3 = scmp.lt.s32.totalorder %s79_s6, %s79_s6 }
  0x29   :  { %v58_v9 = vrot.slane %v57_v6, 4  ;;  %p142_p2 = scmp.ne.s32.totalorder %s79_s6, %s141_s7  ;;  %p147_p4 = scmp.lt.s32.totalorder %s141_s7, %s141_s7 }
  0x2a   :  { %v49_v10 = vadd.f32 %v48_v7, %v47_v5  ;;  %v66_v11 = vrot.slane %v65_v8, 4 }
  0x2b   :  { %v59_v12 = vadd.f32 %v58_v9, %v57_v6  ;;  %p148_p5 = por %p147_p4, %p146_p3 }
  0x2c   :  { %v50_v13 = vrot.slane %v49_v10, 4  ;;  %v67_v14 = vadd.f32 %v66_v11, %v65_v8 }
  0x2d   :  { %v60_v15 = vrot.slane %v59_v12, 2  ;;  %p149_p6 = pnand %p148_p5, %p142_p2 }
  0x2e   :  { %v51_v16 = vadd.f32 %v50_v13, %v49_v10  ;;  %v68_v17 = vrot.slane %v67_v14, 2 }
  0x2f   :  { %v61_v18 = vadd.f32 %v60_v15, %v59_v12 }
  0x30   :  { %v52_v19 = vrot.slane %v51_v16, 2  ;;  %v69_v20 = vadd.f32 %v68_v17, %v67_v14 }
  0x31   :  { %v62_v21 = vrot.slane %v61_v18, 1 }
  0x32   :  { %v53_v22 = vadd.f32 %v52_v19, %v51_v16  ;;  %v70_v23 = vrot.slane %v69_v20, 1 }
  0x33   :  { %v63_v24 = vadd.f32 %v62_v21, %v61_v18 }
  0x34   :  { %v54_v25 = vrot.slane %v53_v22, 1  ;;  %v71_v26 = vadd.f32 %v70_v23, %v69_v20 }
  0x35   :  { %64 = vst [vmem:[#allocation7 + $0x8] sm:$0x1] %v63_v24 }
  0x36   :  { %v55_v27 = vadd.f32 %v54_v25, %v53_v22  ;;  %72 = vst [vmem:[#allocation7 + $0x10] sm:$0x1] %v71_v26 }
  0x38   :  { %56 = vst [vmem:[#allocation7] sm:$0x1] %v55_v27 }
  0x39   :  { %152 = shalt.err (!%p149_p6)
}
  0x3a   :  { %s153_s10 = scalar_lea.hbm %s237_s2, 384 }
  0x3b   :  { %p154_p7 = scmp.ne.s32.totalorder %s237_s2, %s153_s10  ;;  %p157_p8 = scmp.lt.u32.totalorder %s153_s10, %s237_s2 }
  0x3d   :  { %p159_p9 = pnand %p157_p8, %p154_p7 }
  0x3f   :  { %162 = shalt.err (!%p159_p9)
}
  0x40   :  { %84 = dma.vmem_to_hbm [thread:$0]  %s79_s6, 384, %s237_s2, [#allocation4], %s170_s19, %s170_s19, %s171_s20  }
  0x41   :  { %167 = dma.done.wait [#allocation4], 384  }
  0x42   :  { %168 = vsyncadd [#allocation4], 4294966912 }
  0x43   :  { %88 = vsyncpa [#allocation3], 1 }
  0x44   :  { %89 = vsyncpa [#allocation6], 1 }
  0x45   :  { %90 = vsyncpa [#allocation4], 1 }

</bundles_post_ra>
